<compile_context>
chip_gen: v7x
topology: tpu7x:2x2x1
jax: 0.10.0
libtpu: 0.0.40
codegen_flags: <defaults>
</compile_context>

<pallas_src>
import functools
import math

import jax
import jax.numpy as jnp
from jax import lax
from jax.experimental import pallas as pl
from jax.experimental.pallas import tpu as pltpu

_LANE = 128       # TPU lane width (last dim)
_SUBLANE = 8      # f32 sublane width (second-to-last dim)
_MAX_TB = 256     # max batch-tile rows (amortize per-step overhead)
_UNROLL_MAX = 4   # unroll hidden loop up to this depth, else lax.fori_loop
_NEG_BIG = -1e30  # "minus infinity" for padded logit columns (finite, avoids inf arith)


def _round_up(n, m):
    return ((n + m - 1) // m) * m


def _vmem_bytes(shapes):
    total = sum(math.prod(s) for s in shapes) * 4  # all operands are f32
    # double-buffered pipeline + headroom; clamp to stay within v7x's 64 MiB VMEM
    return int(min(max(2 * total + (4 << 20), 16 << 20), 64 << 20))


def _log_softmax_rows(z):
    z_max = jnp.max(z, axis=1, keepdims=True)
    z_shift = z - z_max
    lse = jnp.log(jnp.sum(jnp.exp(z_shift), axis=1, keepdims=True))
    return z_shift - lse


def _mlp_kernel(t_ref, x_ref, wi_ref, bi_ref, wh_ref, bh_ref, wo_ref, bo_ref,
                y_ref, *, n_layers):
    # t_ref is the scalar-prefetch task index; it is consumed by the index_maps only.
    del t_ref
    x = x_ref[...]
    h = jnp.maximum(
        jnp.dot(x, wi_ref[...], preferred_element_type=jnp.float32) + bi_ref[...],
        0.0)

    if n_layers <= _UNROLL_MAX:
        # shallow: static unroll -> concrete layer indices, static VMEM slices
        for l in range(n_layers):
            h = jnp.maximum(
                jnp.dot(h, wh_ref[l], preferred_element_type=jnp.float32)
                + bh_ref[l], 0.0)
    else:
        # deep: tight steady-state loop, one layer's weights live at a time
        def body(l, h):
            return jnp.maximum(
                jnp.dot(h, wh_ref[l], preferred_element_type=jnp.float32)
                + bh_ref[l], 0.0)
        h = lax.fori_loop(0, n_layers, body, h)

    z = jnp.dot(h, wo_ref[...], preferred_element_type=jnp.float32) + bo_ref[...]
    y_ref[...] = _log_softmax_rows(z).astype(y_ref.dtype)


def _linear_softmax_kernel(t_ref, x_ref, wi_ref, bi_ref, y_ref):
    del t_ref
    z = jnp.dot(x_ref[...], wi_ref[...],
                preferred_element_type=jnp.float32) + bi_ref[...]
    y_ref[...] = _log_softmax_rows(z).astype(y_ref.dtype)


class NetPallas:
    """JAX/Pallas port of Net (forward only)."""

    def __init__(self, n_inputs, n_outputs, n_tasks, n_layers, n_hiddens, key):
        self.n_layers = n_layers
        self.n_inputs = n_inputs
        self.n_outputs = n_outputs
        self.n_tasks = n_tasks
        self.nh = n_hiddens

        # lane-pad feature dims so stores / reductions are lane-dense and MXU-aligned
        self.nout_pad = _round_up(n_outputs, _LANE)
        self.nh_pad = _round_up(max(n_hiddens, 1), _LANE) if n_layers > 0 else self.nout_pad

        def uni(k, shape, fan_in):
            bound = 1.0 / jnp.sqrt(jnp.float32(fan_in))
            return jax.random.uniform(k, shape, jnp.float32, -bound, bound)

        keys = jax.random.split(key, 3)
        if n_layers > 0:
            nh, nhp, nop = n_hiddens, self.nh_pad, self.nout_pad
            # per-task input layers (stored (in, out)); zero-padded hidden columns
            wi = uni(keys[0], (n_tasks, n_inputs, nh), n_inputs)
            self.Wi = jnp.pad(wi, ((0, 0), (0, 0), (0, nhp - nh)))
            self.bi = jnp.zeros((n_tasks, 1, nhp), jnp.float32)            # reset_bias -> 0
            # shared hidden layers
            wh = uni(keys[1], (n_layers, nh, nh), nh)
            self.Wh = jnp.pad(wh, ((0, 0), (0, nhp - nh), (0, nhp - nh)))
            self.bh = jnp.zeros((n_layers, 1, nhp), jnp.float32)           # reset_bias -> 0
            # output layer: padded logit columns get a huge negative bias so they
            # contribute exp(.) == 0 to the row-wise logsumexp.
            wo = uni(keys[2], (nh, n_outputs), nh)
            self.Wo = jnp.pad(wo, ((0, nhp - nh), (0, nop - n_outputs)))
            self.bo = jnp.concatenate(
                [jnp.zeros((1, n_outputs), jnp.float32),
                 jnp.full((1, nop - n_outputs), _NEG_BIG, jnp.float32)], axis=1)
        else:
            nop = self.nout_pad
            wi = uni(keys[0], (n_tasks, n_inputs, n_outputs), n_inputs)
            self.Wi = jnp.pad(wi, ((0, 0), (0, 0), (0, nop - n_outputs)))
            bi = jnp.concatenate(
                [jnp.zeros((1, n_outputs), jnp.float32),
                 jnp.full((1, nop - n_outputs), _NEG_BIG, jnp.float32)], axis=1)
            self.bi = jnp.tile(bi[None], (n_tasks, 1, 1))

    # ------------------------------------------------------------------ forward
    def forward(self, x, t):
        """x: (B, n_inputs) float32; t: int or int array (task index)."""
        B = x.shape[0]
        n_in = self.n_inputs
        nop = self.nout_pad
        t_arr = jnp.asarray(t, jnp.int32).reshape(-1)[:1]   # scalar-prefetch task id

        # batch tiling: sublane-aligned; up to 256 rows/tile to amortize per-step
        # overhead while staying MXU-friendly (multiple of 128 when B is large).
        if B >= _MAX_TB:
            tb = _MAX_TB
        elif B >= _LANE:
            tb = _LANE
        else:
            tb = _round_up(B, _SUBLANE)
        b_pad = _round_up(B, tb)
        if b_pad != B:
            x = jnp.pad(x, ((0, b_pad - B), (0, 0)))
        grid = (b_pad // tb,)

        if self.n_layers == 0:
            grid_spec = pltpu.PrefetchScalarGridSpec(
                num_scalar_prefetch=1,
                grid=grid,
                in_specs=[
                    pl.BlockSpec((tb, n_in), lambda i, t_ref: (i, 0)),
                    pl.BlockSpec((None, n_in, nop), lambda i, t_ref: (t_ref[0], 0, 0)),
                    pl.BlockSpec((None, 1, nop), lambda i, t_ref: (t_ref[0], 0, 0)),
                ],
                out_specs=pl.BlockSpec((tb, nop), lambda i, t_ref: (i, 0)),
            )
            vmem = _vmem_bytes([(tb, n_in), (n_in, nop), (1, nop), (tb, nop)])
            y_pad = pl.pallas_call(
                _linear_softmax_kernel,
                out_shape=jax.ShapeDtypeStruct((b_pad, nop), jnp.float32),
                grid_spec=grid_spec,
                compiler_params=pltpu.CompilerParams(
                    dimension_semantics=("parallel",),
                    vmem_limit_bytes=vmem),
            )(t_arr, x, self.Wi, self.bi)
            return y_pad[:B, :self.n_outputs]

        nhp = self.nh_pad
        nl = self.n_layers
        kernel = functools.partial(_mlp_kernel, n_layers=nl)
        grid_spec = pltpu.PrefetchScalarGridSpec(
            num_scalar_prefetch=1,
            grid=grid,
            in_specs=[
                # x: batch-tiled, pipelined over the grid
                pl.BlockSpec((tb, n_in), lambda i, t_ref: (i, 0)),
                # per-task input layer selected via the prefetched scalar
                pl.BlockSpec((None, n_in, nhp), lambda i, t_ref: (t_ref[0], 0, 0)),
                pl.BlockSpec((None, 1, nhp), lambda i, t_ref: (t_ref[0], 0, 0)),
                # shared hidden/output weights: VMEM-resident across all batch tiles
                pl.BlockSpec((nl, nhp, nhp), lambda i, t_ref: (0, 0, 0)),
                pl.BlockSpec((nl, 1, nhp), lambda i, t_ref: (0, 0, 0)),
                pl.BlockSpec((nhp, nop), lambda i, t_ref: (0, 0)),
                pl.BlockSpec((1, nop), lambda i, t_ref: (0, 0)),
            ],
            out_specs=pl.BlockSpec((tb, nop), lambda i, t_ref: (i, 0)),
        )
        vmem = _vmem_bytes([
            (tb, n_in), (n_in, nhp), (1, nhp),
            (nl, nhp, nhp), (nl, 1, nhp),
            (nhp, nop), (1, nop), (tb, nop)])
        y_pad = pl.pallas_call(
            kernel,
            out_shape=jax.ShapeDtypeStruct((b_pad, nop), jnp.float32),
            grid_spec=grid_spec,
            compiler_params=pltpu.CompilerParams(
                dimension_semantics=("parallel",),
                vmem_limit_bytes=vmem),
        )(t_arr, x, self.Wi, self.bi, self.Wh, self.bh, self.Wo, self.bo)
        return y_pad[:B, :self.n_outputs]


def _reference_forward(net, x, t):
    """Pure-JAX reference using the UNPADDED logical weights (original PyTorch math)."""
    t = int(jnp.asarray(t).reshape(-1)[0])
    no = net.n_outputs
    if net.n_layers == 0:
        z = x @ net.Wi[t][:, :no] + net.bi[t][:, :no]
        return jax.nn.log_softmax(z, axis=1)
    nh = net.nh
    h = jnp.maximum(x @ net.Wi[t][:, :nh] + net.bi[t][:, :nh], 0.0)
    for l in range(net.n_layers):
        h = jnp.maximum(h @ net.Wh[l][:nh, :nh] + net.bh[l][:, :nh], 0.0)
    z = h @ net.Wo[:nh, :no] + net.bo[:, :no]
    return jax.nn.log_softmax(z, axis=1)


if __name__ == "__main__":
    key = jax.random.PRNGKey(0)
    k1, k2, k3, kx1, kx2, kx3 = jax.random.split(key, 6)

    # --- config 1: small MLP, unrolled hidden loop, single batch tile ---
    net = NetPallas(n_inputs=32, n_outputs=16, n_tasks=3, n_layers=2,
                    n_hiddens=32, key=k1)
    x = jax.random.normal(kx1, (8, 32), jnp.float32)
    y = jax.block_until_ready(net.forward(x, 1))
    y_ref = _reference_forward(net, x, 1)
    assert y.shape == (8, 16)
    assert jnp.allclose(y, y_ref, atol=5e-5, rtol=5e-5)
    assert jnp.allclose(jnp.sum(jnp.exp(y), axis=1), 1.0, atol=1e-4)

    # --- config 2: deeper net -> lax.fori_loop path, B > 128 -> multi-tile batch grid ---
    net2 = NetPallas(n_inputs=32, n_outputs=16, n_tasks=3, n_layers=6,
                     n_hiddens=64, key=k2)
    x2 = jax.random.normal(kx2, (200, 32), jnp.float32)
    y2 = jax.block_until_ready(net2.forward(x2, jnp.array([2], jnp.int32)))
    y2_ref = _reference_forward(net2, x2, 2)
    assert y2.shape == (200, 16)
    assert jnp.allclose(y2, y2_ref, atol=5e-5, rtol=5e-5)

    # --- config 3: n_layers == 0 branch ---
    net3 = NetPallas(n_inputs=32, n_outputs=16, n_tasks=3, n_layers=0,
                     n_hiddens=0, key=k3)
    x3 = jax.random.normal(kx3, (8, 32), jnp.float32)
    y3 = jax.block_until_ready(net3.forward(x3, 0))
    y3_ref = _reference_forward(net3, x3, 0)
    assert y3.shape == (8, 16)
    assert jnp.allclose(y3, y3_ref, atol=5e-5, rtol=5e-5)

    # --- config 4: large batch -> 256-row tiles (overhead amortization path) ---
    net4 = NetPallas(n_inputs=32, n_outputs=16, n_tasks=3, n_layers=2,
                     n_hiddens=64, key=k1)
    x4 = jax.random.normal(kx2, (300, 32), jnp.float32)
    y4 = jax.block_until_ready(net4.forward(x4, 0))
    y4_ref = _reference_forward(net4, x4, 0)
    assert y4.shape == (300, 16)
    assert jnp.allclose(y4, y4_ref, atol=5e-5, rtol=5e-5)

    print("KERNEL_OK")
</pallas_src>

<mosaic_0001>
module attributes {stable_mosaic.version = 11 : i64} {
  func.func @_mlp_kernel(%arg0: i32, %arg1: memref<1xi32, #tpu.memory_space<smem>>, %arg2: memref<8x32xf32, #tpu.memory_space<vmem>>, %arg3: memref<1x32x128xf32, #tpu.memory_space<vmem>>, %arg4: memref<1x1x128xf32, #tpu.memory_space<vmem>>, %arg5: memref<2x128x128xf32, #tpu.memory_space<vmem>>, %arg6: memref<2x1x128xf32, #tpu.memory_space<vmem>>, %arg7: memref<128x128xf32, #tpu.memory_space<vmem>>, %arg8: memref<1x128xf32, #tpu.memory_space<vmem>>, %arg9: memref<8x128xf32, #tpu.memory_space<vmem>>) attributes {dimension_semantics = [#tpu.dimension_semantics<parallel>], iteration_bounds = array<i64: 1>, scalar_prefetch = 1 : i64, scratch_operands = 0 : i64, tpu.core_type = #tpu.core_type<tc>, window_params = [{transform_indices = @transform_0, window_bounds = array<i64: 8, 32>}, {transform_indices = @transform_1, window_bounds = array<i64: 1, 32, 128>}, {transform_indices = @transform_2, window_bounds = array<i64: 1, 1, 128>}, {pipeline_mode = #tpu.pipeline_mode<synchronous>, transform_indices = @transform_3, window_bounds = array<i64: 2, 128, 128>}, {pipeline_mode = #tpu.pipeline_mode<synchronous>, transform_indices = @transform_4, window_bounds = array<i64: 2, 1, 128>}, {pipeline_mode = #tpu.pipeline_mode<synchronous>, transform_indices = @transform_5, window_bounds = array<i64: 128, 128>}, {pipeline_mode = #tpu.pipeline_mode<synchronous>, transform_indices = @transform_6, window_bounds = array<i64: 1, 128>}, {transform_indices = @transform_7, window_bounds = array<i64: 8, 128>}]} {
    %c0 = arith.constant 0 : index
    %c0_0 = arith.constant 0 : index
    %0 = vector.load %arg2[%c0, %c0_0] : memref<8x32xf32, #tpu.memory_space<vmem>>, vector<8x32xf32>
    %c0_1 = arith.constant 0 : index
    %c0_2 = arith.constant 0 : index
    %c0_3 = arith.constant 0 : index
    %1 = vector.load %arg3[%c0_1, %c0_2, %c0_3] : memref<1x32x128xf32, #tpu.memory_space<vmem>>, vector<1x32x128xf32>
    %2 = vector.shape_cast %1 : vector<1x32x128xf32> to vector<32x128xf32>
    %cst = arith.constant dense<0.000000e+00> : vector<8x128xf32>
    %3 = tpu.matmul %0, %2, %cst {dimension_numbers = #tpu.dot_dimension_numbers<[1], [0], [0], [1], [0, 0, 1, 1], [], []>} : vector<8x32xf32>, vector<32x128xf32>, vector<8x128xf32> -> vector<8x128xf32>
    %c0_4 = arith.constant 0 : index
    %c0_5 = arith.constant 0 : index
    %c0_6 = arith.constant 0 : index
    %4 = vector.load %arg4[%c0_4, %c0_5, %c0_6] : memref<1x1x128xf32, #tpu.memory_space<vmem>>, vector<1x1x128xf32>
    %5 = vector.shape_cast %4 : vector<1x1x128xf32> to vector<1x128xf32>
    %6 = vector.broadcast %5 : vector<1x128xf32> to vector<8x128xf32>
    %7 = arith.addf %3, %6 : vector<8x128xf32>
    %cst_7 = arith.constant 0.000000e+00 : f32
    %8 = vector.broadcast %cst_7 : f32 to vector<8x128xf32>
    %9 = arith.maximumf %7, %8 : vector<8x128xf32>
    %c0_8 = arith.constant 0 : index
    %c0_9 = arith.constant 0 : index
    %c0_10 = arith.constant 0 : index
    %10 = vector.load %arg5[%c0_8, %c0_9, %c0_10] : memref<2x128x128xf32, #tpu.memory_space<vmem>>, vector<1x128x128xf32>
    %11 = vector.shape_cast %10 : vector<1x128x128xf32> to vector<128x128xf32>
    %cst_11 = arith.constant dense<0.000000e+00> : vector<8x128xf32>
    %12 = tpu.matmul %9, %11, %cst_11 {dimension_numbers = #tpu.dot_dimension_numbers<[1], [0], [0], [1], [0, 0, 1, 1], [], []>} : vector<8x128xf32>, vector<128x128xf32>, vector<8x128xf32> -> vector<8x128xf32>
    %c0_12 = arith.constant 0 : index
    %c0_13 = arith.constant 0 : index
    %c0_14 = arith.constant 0 : index
    %13 = vector.load %arg6[%c0_12, %c0_13, %c0_14] : memref<2x1x128xf32, #tpu.memory_space<vmem>>, vector<1x1x128xf32>
    %14 = vector.shape_cast %13 : vector<1x1x128xf32> to vector<1x128xf32>
    %15 = vector.broadcast %14 : vector<1x128xf32> to vector<8x128xf32>
    %16 = arith.addf %12, %15 : vector<8x128xf32>
    %cst_15 = arith.constant 0.000000e+00 : f32
    %17 = vector.broadcast %cst_15 : f32 to vector<8x128xf32>
    %18 = arith.maximumf %16, %17 : vector<8x128xf32>
    %c1 = arith.constant 1 : index
    %c0_16 = arith.constant 0 : index
    %c0_17 = arith.constant 0 : index
    %19 = vector.load %arg5[%c1, %c0_16, %c0_17] : memref<2x128x128xf32, #tpu.memory_space<vmem>>, vector<1x128x128xf32>
    %20 = vector.shape_cast %19 : vector<1x128x128xf32> to vector<128x128xf32>
    %cst_18 = arith.constant dense<0.000000e+00> : vector<8x128xf32>
    %21 = tpu.matmul %18, %20, %cst_18 {dimension_numbers = #tpu.dot_dimension_numbers<[1], [0], [0], [1], [0, 0, 1, 1], [], []>} : vector<8x128xf32>, vector<128x128xf32>, vector<8x128xf32> -> vector<8x128xf32>
    %c1_19 = arith.constant 1 : index
    %c0_20 = arith.constant 0 : index
    %c0_21 = arith.constant 0 : index
    %22 = vector.load %arg6[%c1_19, %c0_20, %c0_21] : memref<2x1x128xf32, #tpu.memory_space<vmem>>, vector<1x1x128xf32>
    %23 = vector.shape_cast %22 : vector<1x1x128xf32> to vector<1x128xf32>
    %24 = vector.broadcast %23 : vector<1x128xf32> to vector<8x128xf32>
    %25 = arith.addf %21, %24 : vector<8x128xf32>
    %cst_22 = arith.constant 0.000000e+00 : f32
    %26 = vector.broadcast %cst_22 : f32 to vector<8x128xf32>
    %27 = arith.maximumf %25, %26 : vector<8x128xf32>
    %c0_23 = arith.constant 0 : index
    %c0_24 = arith.constant 0 : index
    %28 = vector.load %arg7[%c0_23, %c0_24] : memref<128x128xf32, #tpu.memory_space<vmem>>, vector<128x128xf32>
    %cst_25 = arith.constant dense<0.000000e+00> : vector<8x128xf32>
    %29 = tpu.matmul %27, %28, %cst_25 {dimension_numbers = #tpu.dot_dimension_numbers<[1], [0], [0], [1], [0, 0, 1, 1], [], []>} : vector<8x128xf32>, vector<128x128xf32>, vector<8x128xf32> -> vector<8x128xf32>
    %c0_26 = arith.constant 0 : index
    %c0_27 = arith.constant 0 : index
    %30 = vector.load %arg8[%c0_26, %c0_27] : memref<1x128xf32, #tpu.memory_space<vmem>>, vector<1x128xf32>
    %31 = vector.broadcast %30 : vector<1x128xf32> to vector<8x128xf32>
    %32 = arith.addf %29, %31 : vector<8x128xf32>
    %cst_28 = arith.constant dense<0xFF800000> : vector<8xf32>
    %33 = vector.multi_reduction <maximumf>, %32, %cst_28 [1] : vector<8x128xf32> to vector<8xf32>
    %34 = vector.shape_cast %33 : vector<8xf32> to vector<8x1xf32>
    %35 = vector.broadcast %34 : vector<8x1xf32> to vector<8x128xf32>
    %36 = arith.subf %32, %35 : vector<8x128xf32>
    %37 = math.exp %36 : vector<8x128xf32>
    %cst_29 = arith.constant dense<0.000000e+00> : vector<8xf32>
    %38 = vector.multi_reduction <add>, %37, %cst_29 [1] : vector<8x128xf32> to vector<8xf32>
    %39 = vector.shape_cast %38 : vector<8xf32> to vector<8x1xf32>
    %40 = math.log %39 : vector<8x1xf32>
    %41 = vector.broadcast %40 : vector<8x1xf32> to vector<8x128xf32>
    %42 = arith.subf %36, %41 : vector<8x128xf32>
    %c0_30 = arith.constant 0 : index
    %c0_31 = arith.constant 0 : index
    %43 = vector.load %arg9[%c0_30, %c0_31] : memref<8x128xf32, #tpu.memory_space<vmem>>, vector<8x128xf32>
    tpu.vector_store %arg9[%c0_30, %c0_31], %42 {strides = array<i32>} : memref<8x128xf32, #tpu.memory_space<vmem>>, vector<8x128xf32>,
    return
  }
  func.func @transform_0(%arg0: i32, %arg1: memref<1xi32, #tpu.memory_space<smem>>) -> (i32, i32) {
    %c0_i32 = arith.constant 0 : i32
    %c0_i32_0 = arith.constant 0 : i32
    return %arg0, %c0_i32 : i32, i32
  }
  func.func @transform_1(%arg0: i32, %arg1: memref<1xi32, #tpu.memory_space<smem>>) -> (i32, i32, i32) {
    %c0 = arith.constant 0 : index
    %0 = memref.load %arg1[%c0] : memref<1xi32, #tpu.memory_space<smem>>
    %c0_i32 = arith.constant 0 : i32
    %c0_i32_0 = arith.constant 0 : i32
    %c0_i32_1 = arith.constant 0 : i32
    return %0, %c0_i32, %c0_i32_0 : i32, i32, i32
  }
  func.func @transform_2(%arg0: i32, %arg1: memref<1xi32, #tpu.memory_space<smem>>) -> (i32, i32, i32) {
    %c0 = arith.constant 0 : index
    %0 = memref.load %arg1[%c0] : memref<1xi32, #tpu.memory_space<smem>>
    %c0_i32 = arith.constant 0 : i32
    %c0_i32_0 = arith.constant 0 : i32
    %c0_i32_1 = arith.constant 0 : i32
    return %0, %c0_i32, %c0_i32_0 : i32, i32, i32
  }
  func.func @transform_3(%arg0: i32, %arg1: memref<1xi32, #tpu.memory_space<smem>>) -> (i32, i32, i32) {
    %c0_i32 = arith.constant 0 : i32
    %c0_i32_0 = arith.constant 0 : i32
    %c0_i32_1 = arith.constant 0 : i32
    %c0_i32_2 = arith.constant 0 : i32
    return %c0_i32, %c0_i32_0, %c0_i32_1 : i32, i32, i32
  }
  func.func @transform_4(%arg0: i32, %arg1: memref<1xi32, #tpu.memory_space<smem>>) -> (i32, i32, i32) {
    %c0_i32 = arith.constant 0 : i32
    %c0_i32_0 = arith.constant 0 : i32
    %c0_i32_1 = arith.constant 0 : i32
    %c0_i32_2 = arith.constant 0 : i32
    return %c0_i32, %c0_i32_0, %c0_i32_1 : i32, i32, i32
  }
  func.func @transform_5(%arg0: i32, %arg1: memref<1xi32, #tpu.memory_space<smem>>) -> (i32, i32) {
    %c0_i32 = arith.constant 0 : i32
    %c0_i32_0 = arith.constant 0 : i32
    %c0_i32_1 = arith.constant 0 : i32
    return %c0_i32, %c0_i32_0 : i32, i32
  }
  func.func @transform_6(%arg0: i32, %arg1: memref<1xi32, #tpu.memory_space<smem>>) -> (i32, i32) {
    %c0_i32 = arith.constant 0 : i32
    %c0_i32_0 = arith.constant 0 : i32
    %c0_i32_1 = arith.constant 0 : i32
    return %c0_i32, %c0_i32_0 : i32, i32
  }
  func.func @transform_7(%arg0: i32, %arg1: memref<1xi32, #tpu.memory_space<smem>>) -> (i32, i32) {
    %c0_i32 = arith.constant 0 : i32
    %c0_i32_0 = arith.constant 0 : i32
    return %arg0, %c0_i32 : i32, i32
  }
}

</mosaic_0001>

<bundles_post_ra>
// kernel: tpu_custom_call.1
= control target key start
LH: loop header
LB: loop body
LE: loop exit
PB: predicated region body
PF: predicated region fallthrough
CT: control target
= control target key end

     0   :  { %14 = vsyncpa [#allocation5], 0  ;;  %s1073_s0 = inlined_call_operand.<no memory space> [shape: s32[1], index: 0, kind: input, shape index: {}]   ;;  %s1074_s1 = inlined_call_operand.hbm [shape: f32[8,32], index: 1, kind: input, shape index: {}]   ;;  %s1075_s2 = inlined_call_operand.hbm [shape: f32[3,32,128], index: 2, kind: input, shape index: {}]   ;;  %s1076_s3 = inlined_call_operand.vmem [shape: f32[3,1,128], index: 3, kind: input, shape index: {}]   ;;  %s1077_s4 = inlined_call_operand.hbm [shape: f32[2,128,128], index: 4, kind: input, shape index: {}]   ;;  %s1078_s5 = inlined_call_operand.vmem [shape: f32[2,1,128], index: 5, kind: input, shape index: {}]   ;;  %s1079_s6 = inlined_call_operand.hbm [shape: f32[128,128], index: 6, kind: input, shape index: {}]   ;;  %s1080_s7 = inlined_call_operand.vmem [shape: f32[1,128], index: 7, kind: input, shape index: {}]   ;;  %s1081_s8 = inlined_call_operand.hbm [shape: f32[8,128], index: 8, kind: output, shape index: {}]  }
   0x1   :  { %15 = vsyncpa [#allocation8], 0 }
   0x2   :  { %16 = vsyncpa [#allocation11], 0  ;;  %s512_s29 = sshll.u32 %s1073_s0, 9 }
   0x3   :  { %17 = vsyncpa [#allocation6], 0  ;;  %s36_s10 = scalar_lea.hbm %s1075_s2, %s512_s29  ;;  %s897_s11 = smov [#allocation7]  }
   0x4   :  { %s37_s12 = sshll.u32 %s897_s11, 4  ;;  %s777_s13 = scalar_lea.hbm %s36_s10, 512  ;;  %s38_s12 = int_to_ptr.vmem [resolvable:$true] %s37_s12 }
   0x5   :  { %p778_p0 = scmp.ne.s32.totalorder %s36_s10, %s777_s13  ;;  %s779_s16 = scalar_lea.hbm %s1075_s2, 1536 }
   0x6   :  { %p780_p1 = scmp.lt.u32.totalorder %s36_s10, %s1075_s2  ;;  %p781_p2 = scmp.lt.u32.totalorder %s779_s16, %s777_s13 }
   0x7   :  { %p783_p4 = scmp.lt.u32.totalorder %s777_s13, %s36_s10 }
   0x8   :  { %p782_p3 = por %p781_p2, %p780_p1 }
   0xa   :  { %p784_p5 = por %p783_p4, %p782_p3 }
   0xc   :  { %p785_p6 = pnand %p784_p5, %p778_p0 }
   0xe   :  { %788 = shalt.err (!%p785_p6)
}
   0xf   :  { %s789_s19 = scalar_lea.vmem %s38_s12, 512  ;;  %p794_p8 = scmp.lt.s32.totalorder %s38_s12, %s38_s12 }
  0x10   :  { %p790_p7 = scmp.ne.s32.totalorder %s38_s12, %s789_s19  ;;  %p795_p9 = scmp.lt.s32.totalorder %s789_s19, %s789_s19 }
  0x12   :  { %p796_p10 = por %p795_p9, %p794_p8 }
  0x14   :  { %p797_p11 = pnand %p796_p10, %p790_p7 }
  0x16   :  { %800 = shalt.err (!%p797_p11)
}
  0x17   :  { %s898_s20 = smov 128   ;;  %s899_s21 = smov 8  }
  0x18   :  { %43 = dma.hbm_to_vmem [thread:$0]  %s36_s10, 512, %s38_s12, [#allocation8], %s898_s20, %s898_s20, %s899_s21  }
  0x19   :  { %s900_s2 = smov [#allocation4]   ;;  %s901_s23 = smov [#allocation9]  }
  0x1a   :  { %s24_s22 = sshll.u32 %s900_s2, 4  ;;  %s56_s24 = sshll.u32 %s901_s23, 4  ;;  %s25_s22 = int_to_ptr.vmem [resolvable:$true] %s24_s22  ;;  %s57_s24 = int_to_ptr.vmem [resolvable:$true] %s56_s24 }
  0x1b   :  { %s801_s27 = scalar_lea.hbm %s1074_s1, 128 }
  0x1c   :  { %p802_p12 = scmp.ne.s32.totalorder %s1074_s1, %s801_s27  ;;  %p805_p13 = scmp.lt.u32.totalorder %s801_s27, %s1074_s1 }
  0x1e   :  { %p807_p0 = pnand %p805_p13, %p802_p12 }
  0x20   :  { %810 = shalt.err (!%p807_p0)
}
  0x21   :  { %s811_s10 = scalar_lea.vmem %s25_s22, 128  ;;  %p816_p2 = scmp.lt.s32.totalorder %s25_s22, %s25_s22 }
  0x22   :  { %p812_p1 = scmp.ne.s32.totalorder %s25_s22, %s811_s10  ;;  %p817_p3 = scmp.lt.s32.totalorder %s811_s10, %s811_s10 }
  0x24   :  { %p818_p4 = por %p817_p3, %p816_p2 }
  0x26   :  { %p819_p5 = pnand %p818_p4, %p812_p1 }
  0x28   :  { %822 = shalt.err (!%p819_p5)
}
  0x29   :  { %27 = dma.hbm_to_vmem [thread:$0]  %s1074_s1, 128, %s25_s22, [#allocation5]  }
  0x2a   :  { %s823_s15 = scalar_lea.hbm %s1077_s4, 4096 }
  0x2b   :  { %p824_p6 = scmp.ne.s32.totalorder %s1077_s4, %s823_s15  ;;  %p827_p7 = scmp.lt.u32.totalorder %s823_s15, %s1077_s4 }
  0x2d   :  { %p829_p8 = pnand %p827_p7, %p824_p6 }
  0x2f   :  { %832 = shalt.err (!%p829_p8)
}
  0x30   :  { %s833_s2 = scalar_lea.vmem %s57_s24, 4096  ;;  %p838_p10 = scmp.lt.s32.totalorder %s57_s24, %s57_s24 }
  0x31   :  { %p834_p9 = scmp.ne.s32.totalorder %s57_s24, %s833_s2  ;;  %p839_p11 = scmp.lt.s32.totalorder %s833_s2, %s833_s2 }
  0x33   :  { %p840_p12 = por %p839_p11, %p838_p10 }
  0x35   :  { %p841_p13 = pnand %p840_p12, %p834_p9 }
  0x37   :  { %844 = shalt.err (!%p841_p13)
}
  0x38   :  { %62 = dma.hbm_to_vmem [thread:$0]  %s1077_s4, 4096, %s57_s24, [#allocation8], %s898_s20, %s898_s20, %s899_s21  }
  0x39   :  { %s902_s23 = smov [#allocation10]   ;;  %s845_s28 = scalar_lea.hbm %s1079_s6, 2048 }
  0x3a   :  { %s70_s25 = sshll.u32 %s902_s23, 4  ;;  %p846_p0 = scmp.ne.s32.totalorder %s1079_s6, %s845_s28  ;;  %s71_s25 = int_to_ptr.vmem [resolvable:$true] %s70_s25 }
  0x3b   :  { %p849_p1 = scmp.lt.u32.totalorder %s845_s28, %s1079_s6 }
  0x3d   :  { %p851_p2 = pnand %p849_p1, %p846_p0 }
  0x3f   :  { %854 = shalt.err (!%p851_p2)
}
  0x40   :  { %s855_s11 = scalar_lea.vmem %s71_s25, 2048  ;;  %p860_p4 = scmp.lt.s32.totalorder %s71_s25, %s71_s25 }
  0x41   :  { %p856_p3 = scmp.ne.s32.totalorder %s71_s25, %s855_s11  ;;  %p861_p5 = scmp.lt.s32.totalorder %s855_s11, %s855_s11 }
  0x43   :  { %p862_p6 = por %p861_p5, %p860_p4 }
  0x45   :  { %p863_p7 = pnand %p862_p6, %p856_p3 }
  0x47   :  { %866 = shalt.err (!%p863_p7)
}
  0x48   :  { %76 = dma.hbm_to_vmem [thread:$0]  %s1079_s6, 2048, %s71_s25, [#allocation11], %s898_s20, %s898_s20, %s899_s21  }
  0x49   :  { %889 = dma.done.wait [#allocation5], 128  }
  0x4a   :  { %890 = vsyncadd [#allocation5], 4294967168 }
  0x4b   :  { %891 = dma.done.wait [#allocation8], 4608  }
  0x4c   :  { %892 = vsyncadd [#allocation8], 4294962688 }
  0x4d   :  { %893 = dma.done.wait [#allocation11], 2048  }
  0x4e   :  { %894 = vsyncadd [#allocation11], 4294965248  ;;  %v903_v0 = vmov 0.0|0.0   ;;  %vm904_vm0 = vmmov 0   ;;  %v905_v1 = vmov 0.0   ;;  %v102_v2 = vld [vmem:[#allocation7] sm:$0xff] }
  0x4f   :  { %685 = vmatprep.subr.bf16.mxu0 %v903_v0  ;;  %577 = vmatprep.mubr.msk.f32.mxu0 %vm904_vm0, %v905_v1  ;;  %v103_v3 = vld [vmem:[#allocation7 + $0x8] sm:$0xff]  ;;  %v104_v4 = vld [vmem:[#allocation7 + $0x10] sm:$0xff]  ;;  %v105_v6 = vld [vmem:[#allocation7 + $0x18] sm:$0xff]  ;;  %vm113_vm1 = vcmask 261120   ;;  %p97_p8 = scmp.lt.s32.totalorder %s1073_s0, 2 }
  0x50   :  { %691 = vmatprep.subr.bf16.mxu1 %v903_v0  ;;  %612 = vmatprep.mubr.msk.f32.mxu1 %vm904_vm0, %v905_v1  ;;  %v686_v5 = vpack.c.bf16 %v103_v3, %v102_v2  ;;  %v188_v7 = vld [vmem:[#allocation9] sm:$0xff]  ;;  %v189_v8 = vld [vmem:[#allocation9 + $0x8] sm:$0xff]  ;;  %v190_v9 = vld [vmem:[#allocation9 + $0x10] sm:$0xff]  ;;  %v689_v11 = vpack.c.bf16 %v105_v6, %v104_v4 }
  0x51   :  { %v191_v10 = vld [vmem:[#allocation9 + $0x18] sm:$0xff]  ;;  %v692_v12 = vpack.c.bf16 %v189_v8, %v188_v7  ;;  %v192_v14 = vld [vmem:[#allocation9 + $0x20] sm:$0xff]  ;;  %v193_v15 = vld [vmem:[#allocation9 + $0x28] sm:$0xff]  ;;  %s1083_s0 = smov (!%p97_p8, %s1073_s0), 2 }
  0x52   :  { %687 = vmatpush3.bf16.msra.mxu0 %v686_v5  ;;  %v695_v13 = vpack.c.bf16 %v191_v10, %v190_v9  ;;  %v101_v16 = vld [vmem:[#allocation4] sm:$0xff]  ;;  %v698_v17 = vpack.c.bf16 %v193_v15, %v192_v14  ;;  %v194_v18 = vld [vmem:[#allocation9 + $0x30] sm:$0xff]  ;;  %v196_v21 = vld [vmem:[#allocation9 + $0x40] sm:$0xff]  ;;  %s99_s15 = scalar_lea.vmem %s1076_s3, %s1083_s0 }
  0x53   :  { %688 = vmatprep.subr.bf16.mxu0 %v903_v0  ;;  %693 = vmatpush3.bf16.msra.mxu1 %v692_v12  ;;  %v195_v19 = vld [vmem:[#allocation9 + $0x38] sm:$0xff]  ;;  %v197_v22 = vld [vmem:[#allocation9 + $0x48] sm:$0xff]  ;;  %v198_v24 = vld [vmem:[#allocation9 + $0x50] sm:$0xff] }
  0x54   :  { %694 = vmatprep.subr.bf16.mxu1 %v903_v0  ;;  %v701_v20 = vpack.c.bf16 %v195_v19, %v194_v18  ;;  %v704_v23 = vpack.c.bf16 %v197_v22, %v196_v21  ;;  %v199_v25 = vld [vmem:[#allocation9 + $0x58] sm:$0xff]  ;;  %v200_v27 = vld [vmem:[#allocation9 + $0x60] sm:$0xff]  ;;  %v201_v28 = vld [vmem:[#allocation9 + $0x68] sm:$0xff] }
  0x55   :  { %v707_v26 = vpack.c.bf16 %v199_v25, %v198_v24  ;;  %v710_v29 = vpack.c.bf16 %v201_v28, %v200_v27  ;;  %v202_v30 = vld [vmem:[#allocation9 + $0x70] sm:$0xff]  ;;  %v203_v31 = vld [vmem:[#allocation9 + $0x78] sm:$0xff]  ;;  %v283_v33 = vld [vmem:[#allocation9 + $0x80] sm:$0xff] }
  0x56   :  { %690 = vmatpush3.bf16.msra.mxu0 %v689_v11  ;;  %v713_v32 = vpack.c.bf16 %v203_v31, %v202_v30  ;;  %v284_v34 = vld [vmem:[#allocation9 + $0x88] sm:$0xff]  ;;  %v285_v35 = vld [vmem:[#allocation9 + $0x90] sm:$0xff]  ;;  %v286_v37 = vld [vmem:[#allocation9 + $0x98] sm:$0xff] }
  0x57   :  { %715 = vmatprep.subr.bf16.mxu0 %v903_v0  ;;  %696 = vmatpush3.bf16.msra.mxu1 %v695_v13  ;;  %v716_v36 = vpack.c.bf16 %v284_v34, %v283_v33  ;;  %v719_v38 = vpack.c.bf16 %v286_v37, %v285_v35  ;;  %v287_v39 = vld [vmem:[#allocation9 + $0xa0] sm:$0xff]  ;;  %v288_v40 = vld [vmem:[#allocation9 + $0xa8] sm:$0xff]  ;;  %v289_v42 = vld [vmem:[#allocation9 + $0xb0] sm:$0xff] }
  0x58   :  { %697 = vmatprep.subr.bf16.mxu1 %v903_v0  ;;  %v722_v41 = vpack.c.bf16 %v288_v40, %v287_v39  ;;  %v290_v43 = vld [vmem:[#allocation9 + $0xb8] sm:$0xff]  ;;  %v291_v45 = vld [vmem:[#allocation9 + $0xc0] sm:$0xff]  ;;  %v292_v46 = vld [vmem:[#allocation9 + $0xc8] sm:$0xff] }
  0x59   :  { %578 = vmatmul.mubr.msk.f32.vlgmr.msra.gmra.mrb[0].mxu0 %vm113_vm1, %v101_v16  ;;  %v725_v44 = vpack.c.bf16 %v290_v43, %v289_v42  ;;  %v728_v47 = vpack.c.bf16 %v292_v46, %v291_v45  ;;  %v293_v48 = vld [vmem:[#allocation9 + $0xd0] sm:$0xff]  ;;  %v294_v49 = vld [vmem:[#allocation9 + $0xd8] sm:$0xff]  ;;  %v295_v51 = vld [vmem:[#allocation9 + $0xe0] sm:$0xff] }
  0x5a   :  { %647 = vmatprep.mubr.msk.f32.mxu0 %vm904_vm0, %v905_v1  ;;  %717 = vmatpush3.bf16.msra.mxu0 %v716_v36  ;;  %v731_v50 = vpack.c.bf16 %v294_v49, %v293_v48  ;;  %v296_v52 = vld [vmem:[#allocation9 + $0xe8] sm:$0xff]  ;;  %v506_v54 = vld [vmem:[%s99_s15] ss:$0 sm:$0xff]  ;;  %v297_v59 = vld [vmem:[#allocation9 + $0xf0] sm:$0xff] }
  0x5b   :  { %699 = vmatpush3.bf16.msra.mxu1 %v698_v17  ;;  %718 = vmatprep.subr.bf16.mxu0 %v903_v0  ;;  %v734_v53 = vpack.c.bf16 %v296_v52, %v295_v51  ;;  %v298_v60 = vld [vmem:[#allocation9 + $0xf8] sm:$0xff]  ;;  %v378_v62 = vld [vmem:[#allocation10] sm:$0xff]  ;;  %v379_v63 = vld [vmem:[#allocation10 + $0x8] sm:$0xff] }
  0x5c   :  { %700 = vmatprep.subr.bf16.mxu1 %v903_v0  ;;  %v737_v61 = vpack.c.bf16 %v298_v60, %v297_v59  ;;  %v380_v2 = vld [vmem:[#allocation10 + $0x10] sm:$0xff]  ;;  %v740_v3 = vpack.c.bf16 %v379_v63, %v378_v62  ;;  %v381_v4 = vld [vmem:[#allocation10 + $0x18] sm:$0xff]  ;;  %v382_v6 = vld [vmem:[#allocation10 + $0x20] sm:$0xff] }
  0x5d   :  { %v743_v5 = vpack.c.bf16 %v381_v4, %v380_v2  ;;  %v383_v7 = vld [vmem:[#allocation10 + $0x28] sm:$0xff]  ;;  %v385_v9 = vld [vmem:[#allocation10 + $0x38] sm:$0xff]  ;;  %v386_v11 = vld [vmem:[#allocation10 + $0x40] sm:$0xff] }
  0x5e   :  { %720 = vmatpush3.bf16.msra.mxu0 %v719_v38  ;;  %v746_v8 = vpack.c.bf16 %v383_v7, %v382_v6  ;;  %v387_v12 = vld [vmem:[#allocation10 + $0x48] sm:$0xff]  ;;  %v388_v14 = vld [vmem:[#allocation10 + $0x50] sm:$0xff]  ;;  %v389_v15 = vld [vmem:[#allocation10 + $0x58] sm:$0xff] }
  0x5f   :  { %702 = vmatpush3.bf16.msra.mxu1 %v701_v20  ;;  %721 = vmatprep.subr.bf16.mxu0 %v903_v0  ;;  %v752_v13 = vpack.c.bf16 %v387_v12, %v386_v11  ;;  %v755_v16 = vpack.c.bf16 %v389_v15, %v388_v14  ;;  %v390_v17 = vld [vmem:[#allocation10 + $0x60] sm:$0xff]  ;;  %v391_v18 = vld [vmem:[#allocation10 + $0x68] sm:$0xff]  ;;  %v508_v20 = vld [vmem:[%s1078_s5] ss:$0 sm:$0xff] }
  0x60   :  { %703 = vmatprep.subr.bf16.mxu1 %v903_v0  ;;  %v758_v19 = vpack.c.bf16 %v391_v18, %v390_v17  ;;  %v392_v25 = vld [vmem:[#allocation10 + $0x70] sm:$0xff]  ;;  %v510_v28 = vld [vmem:[%s1078_s5 + $0x1] ss:$0 sm:$0xff]  ;;  %s906_s5 = smov [#allocation12]  }
  0x61   :  { %s488_s2 = sshll.u32 %s906_s5, 4  ;;  %s489_s2 = int_to_ptr.vmem [resolvable:$true] %s488_s2 }
  0x62   :  { %723 = vmatpush3.bf16.msra.mxu0 %v722_v41  ;;  %p872_p10 = scmp.lt.s32.totalorder %s489_s2, %s489_s2 }
  0x63   :  { %705 = vmatpush3.bf16.msra.mxu1 %v704_v23  ;;  %724 = vmatprep.subr.bf16.mxu0 %v903_v0 }
  0x64   :  { %706 = vmatprep.subr.bf16.mxu1 %v903_v0 }
  0x66   :  { %726 = vmatpush3.bf16.msra.mxu0 %v725_v44 }
  0x67   :  { %708 = vmatpush3.bf16.msra.mxu1 %v707_v26  ;;  %727 = vmatprep.subr.bf16.mxu0 %v903_v0  ;;  %v393_v26 = vld [vmem:[#allocation10 + $0x78] sm:$0xff] }
  0x68   :  { %709 = vmatprep.subr.bf16.mxu1 %v903_v0  ;;  %v761_v27 = vpack.c.bf16 %v393_v26, %v392_v25 }
  0x6a   :  { %729 = vmatpush3.bf16.msra.mxu0 %v728_v47 }
  0x6b   :  { %711 = vmatpush3.bf16.msra.mxu1 %v710_v29  ;;  %730 = vmatprep.subr.bf16.mxu0 %v903_v0 }
  0x6c   :  { %712 = vmatprep.subr.bf16.mxu1 %v903_v0 }
  0x6e   :  { %732 = vmatpush3.bf16.msra.mxu0 %v731_v50 }
  0x6f   :  { %714 = vmatpush3.bf16.msra.mxu1 %v713_v32  ;;  %733 = vmatprep.subr.bf16.mxu0 %v903_v0  ;;  %v511_v32 = vld [vmem:[%s1080_s7] ss:$0 sm:$0xff]  ;;  %s867_s7 = scalar_lea.vmem %s489_s2, 128 }
  0x70   :  { %739 = vmatprep.subr.bf16.mxu1 %v903_v0  ;;  %p868_p9 = scmp.ne.s32.totalorder %s489_s2, %s867_s7  ;;  %p873_p11 = scmp.lt.s32.totalorder %s867_s7, %s867_s7 }
  0x72   :  { %735 = vmatpush3.bf16.msra.mxu0 %v734_v53  ;;  %p874_p12 = por %p873_p11, %p872_p10 }
  0x73   :  { %736 = vmatprep.subr.bf16.mxu0 %v903_v0 }
  0x74   :  { %p875_p13 = pnand %p874_p12, %p868_p9 }
  0x76   :  { %738 = vmatpush3.bf16.msra.mxu0 %v737_v61 }
 0x12c   :  { %v183_v55 = vpop.f32.mrb[0].mxu0 }
 0x12d   :  { %v184_v56 = vadd.f32 %v506_v54, %v183_v55  ;;  %v579_v57 = vpop.f32.mrb[1].mxu0 }
 0x12f   :  { %v187_v58 = vmax.f32 %v184_v56, 0.0 }
 0x131   :  { %613 = vmatmul.mubr.f32.vlgmr.msra.gmra.mrb[0].mxu1 %v187_v58 }
 0x132   :  { %682 = vmatprep.mubr.msk.f32.mxu1 %vm904_vm0, %v905_v1  ;;  %741 = vmatpush3.bf16.msra.mxu1 %v740_v3  ;;  %v384_v1 = vld [vmem:[#allocation10 + $0x30] sm:$0xff] }
 0x133   :  { %742 = vmatprep.subr.bf16.mxu1 %v903_v0  ;;  %v749_v10 = vpack.c.bf16 %v385_v9, %v384_v1 }
 0x136   :  { %744 = vmatpush3.bf16.msra.mxu1 %v743_v5 }
 0x137   :  { %745 = vmatprep.subr.bf16.mxu1 %v903_v0 }
 0x13a   :  { %747 = vmatpush3.bf16.msra.mxu1 %v746_v8 }
 0x13b   :  { %748 = vmatprep.subr.bf16.mxu1 %v903_v0 }
 0x13e   :  { %750 = vmatpush3.bf16.msra.mxu1 %v749_v10 }
 0x13f   :  { %751 = vmatprep.subr.bf16.mxu1 %v903_v0 }
 0x142   :  { %753 = vmatpush3.bf16.msra.mxu1 %v752_v13 }
 0x143   :  { %754 = vmatprep.subr.bf16.mxu1 %v903_v0 }
 0x146   :  { %756 = vmatpush3.bf16.msra.mxu1 %v755_v16 }
 0x147   :  { %757 = vmatprep.subr.bf16.mxu1 %v903_v0 }
 0x14a   :  { %759 = vmatpush3.bf16.msra.mxu1 %v758_v19 }
 0x14b   :  { %760 = vmatprep.subr.bf16.mxu1 %v903_v0 }
 0x14e   :  { %762 = vmatpush3.bf16.msra.mxu1 %v761_v27 }
 0x204   :  { %v277_v21 = vpop.f32.mrb[0].mxu1 }
 0x205   :  { %v278_v22 = vadd.f32 %v508_v20, %v277_v21  ;;  %v614_v23 = vpop.f32.mrb[1].mxu1 }
 0x207   :  { %v281_v24 = vmax.f32 %v278_v22, 0.0 }
 0x209   :  { %648 = vmatmul.mubr.f32.vlgmr.msra.gmra.mrb[2].mxu0 %v281_v24 }
 0x2dc   :  { %v373_v29 = vpop.f32.mrb[2].mxu0 }
 0x2dd   :  { %v374_v30 = vadd.f32 %v510_v28, %v373_v29  ;;  %v649_v0 = vpop.f32.mrb[3].mxu0 }
 0x2df   :  { %v377_v31 = vmax.f32 %v374_v30, 0.0 }
 0x2e1   :  { %683 = vmatmul.mubr.f32.vlgmr.msra.gmra.mrb[2].mxu1 %v377_v31 }
 0x3b4   :  { %v467_v33 = vpop.f32.mrb[2].mxu1 }
 0x3b5   :  { %v468_v34 = vadd.f32 %v511_v32, %v467_v33  ;;  %v684_v35 = vpop.f32.mrb[3].mxu1 }
 0x3b7   :  { %471 = vmax.xlane.f32.xlu0 %v468_v34 }
 0x444   :  { %v472_v36 = vpop.xlane.xlu0 %471 }
 0x445   :  { %v473_v37 = vsub.f32 %v468_v34, %v472_v36 }
 0x447   :  { %v474_v38 = vmul.f32 1.442695, %v473_v37 }
 0x449   :  { %773 = vpow2.f32 %v474_v38 }
 0x453   :  { %v774_v39 = vpop.eup %773 }
 0x454   :  { %476 = vadd.xlane.f32.xlu0 %v774_v39 }
 0x4e1   :  { %v477_v40 = vpop.xlane.xlu0 %476 }
 0x4e2   :  { %775 = vlog2.f32 %v477_v40 }
 0x4ec   :  { %v776_v41 = vpop.eup %775 }
 0x4ed   :  { %v479_v42 = vmul.f32 0.6931472, %v776_v41 }
 0x4ef   :  { %v480_v43 = vsub.f32 %v473_v37, %v479_v42 }
 0x4f1   :  { %481 = vst [vmem:[#allocation12] sm:$0xff] %v480_v43 }
 0x4f2   :  { %878 = shalt.err (!%p875_p13)
}
 0x4f3   :  { %s879_s23 = scalar_lea.hbm %s1081_s8, 128 }
 0x4f4   :  { %p880_p0 = scmp.ne.s32.totalorder %s1081_s8, %s879_s23  ;;  %p883_p1 = scmp.lt.u32.totalorder %s879_s23, %s1081_s8 }
 0x4f6   :  { %p885_p2 = pnand %p883_p1, %p880_p0 }
 0x4f8   :  { %888 = shalt.err (!%p885_p2)
}
 0x4f9   :  { %491 = dma.vmem_to_hbm [thread:$0]  %s489_s2, 128, %s1081_s8, [#allocation6]  }
 0x4fa   :  { %895 = dma.done.wait [#allocation6], 128  }
 0x4fb   :  { %896 = vsyncadd [#allocation6], 4294967168 }
 0x4fc   :  { %495 = vsyncpa [#allocation5], 1 }
 0x4fd   :  { %496 = vsyncpa [#allocation8], 1 }
 0x4fe   :  { %497 = vsyncpa [#allocation11], 1 }
 0x4ff   :  { %498 = vsyncpa [#allocation6], 1 }

</bundles_post_ra>
